<compile_context>
chip_gen: v6e
topology: v6e:2x2x1
jax: 0.10.0
libtpu: 0.0.40
codegen_flags: <defaults>
</compile_context>

<pallas_src>
import jax
import jax.numpy as jnp
import numpy as np
from jax.experimental import pallas as pl
from jax.experimental.pallas import tpu as pltpu


def _round_up(x, m):
    return ((x + m - 1) // m) * m


def rnn_kernel(pre_ref, whh_ref, wfc_ref, bfc_ref, out_ref, h_scratch):
    """One TT-step chunk of the tanh recurrence + gated final FC.

    pre_ref : (TT, B_pad, H_pad) f32  hoisted input projection x_t@W_ih^T + b
    whh_ref : (H_pad, H_pad)     bf16 W_hh^T (zero padded)
    wfc_ref : (H_pad, O_pad)     bf16 W_fc^T (zero padded)
    bfc_ref : (1, O_pad)         f32  fc bias (zero padded)
    out_ref : (B_pad, O_pad)     f32  resident across the T grid axis
    h_scratch: (B_pad, H_pad)    f32  hidden state, persists across grid steps
    """
    t_blk = pl.program_id(0)

    @pl.when(t_blk == 0)
    def _init():
        h_scratch[...] = jnp.zeros_like(h_scratch)

    TT = pre_ref.shape[0]
    whh = whh_ref[...]                       # (H_pad, H_pad) bf16, hoisted

    # Keep h in vregs for the whole chunk (B_pad x H_pad = one vreg at demo
    # sizes); only touch the scratch at chunk boundaries.
    h = h_scratch[...]
    for t in range(TT):                      # static unroll, bounded by grid
        pre = pre_ref[t] + jnp.dot(h.astype(jnp.bfloat16), whh,
                                   preferred_element_type=jnp.float32)
        h = jnp.tanh(pre)                    # f32 tanh -> EUP slot
    h_scratch[...] = h

    @pl.when(t_blk == pl.num_programs(0) - 1)
    def _finalize():
        out_ref[...] = (jnp.dot(h_scratch[...].astype(jnp.bfloat16),
                                wfc_ref[...],
                                preferred_element_type=jnp.float32)
                        + bfc_ref[...])


def rnn_model_forward(tokens, params, *, tt=8):
    """Forward pass matching the PyTorch RNNModel.forward."""
    emb_table = params["embedding"]            # (V, E)
    w_ih = params["w_ih"]                      # (H, E)  torch layout
    w_hh = params["w_hh"]                      # (H, H)
    b_ih = params["b_ih"]                      # (H,)
    b_hh = params["b_hh"]                      # (H,)
    w_fc = params["w_fc"]                      # (O, H)
    b_fc = params["b_fc"]                      # (O,)

    B, T = tokens.shape
    H = w_hh.shape[0]
    O = w_fc.shape[0]

    # Lane/sublane friendly padded shapes.
    B_pad = _round_up(B, 8)
    H_pad = _round_up(H, 128)
    O_pad = _round_up(O, 128)

    # ---- XLA glue: embedding gather + hoisted input projection -------------
    # pre[t, b, :] = emb[b, t, :] @ W_ih^T + (b_ih + b_hh)
    # One large (T*B, E)@(E, H) matmul; bf16 operands, f32 accumulation.
    # The einsum also produces the time-major layout directly (no separate
    # HBM transpose pass of the embedding stream).
    emb = jnp.take(emb_table, tokens, axis=0).astype(jnp.bfloat16)   # (B, T, E)
    pre = jnp.einsum("bte,eh->tbh", emb, w_ih.T.astype(jnp.bfloat16),
                     preferred_element_type=jnp.float32)             # (T, B, H)
    pre = pre + (b_ih + b_hh).astype(jnp.float32)[None, None, :]

    # Pad batch / hidden with zeros; pad the *front* of the time axis so T is
    # a multiple of tt.  Leading zero pre-activation steps are exact no-ops:
    # h0 = 0 and tanh(0 + 0 @ W_hh^T) = 0.
    num_chunks = (T + tt - 1) // tt
    T_pad = num_chunks * tt
    pre = jnp.pad(pre, ((T_pad - T, 0), (0, B_pad - B), (0, H_pad - H)))

    whh_t = jnp.pad(w_hh.T, ((0, H_pad - H), (0, H_pad - H))).astype(jnp.bfloat16)
    wfc_t = jnp.pad(w_fc.T, ((0, H_pad - H), (0, O_pad - O))).astype(jnp.bfloat16)
    bfc = jnp.pad(b_fc, (0, O_pad - O)).astype(jnp.float32).reshape(1, O_pad)

    out_pad = pl.pallas_call(
        rnn_kernel,
        out_shape=jax.ShapeDtypeStruct((B_pad, O_pad), jnp.float32),
        grid=(num_chunks,),
        in_specs=[
            # pre-activation stream: chunked over T -> double-buffered DMA
            pl.BlockSpec((tt, B_pad, H_pad), lambda t: (t, 0, 0)),
            # weights / bias: same block every step (resident in VMEM)
            pl.BlockSpec((H_pad, H_pad), lambda t: (0, 0)),
            pl.BlockSpec((H_pad, O_pad), lambda t: (0, 0)),
            pl.BlockSpec((1, O_pad), lambda t: (0, 0)),
        ],
        out_specs=pl.BlockSpec((B_pad, O_pad), lambda t: (0, 0)),
        scratch_shapes=[pltpu.VMEM((B_pad, H_pad), jnp.float32)],
        compiler_params=pltpu.CompilerParams(
            # serial recurrence across T chunks
            dimension_semantics=("arbitrary",),
            # explicit scoped-VMEM budget with headroom; safe on v5e/v6e/v7x
            # (weights + 2x double-buffered chunk + h scratch << 32 MiB here).
            vmem_limit_bytes=32 * 1024 * 1024,
        ),
    )(pre, whh_t, wfc_t, bfc)

    # TODO(synk): for large production B, add a leading 'parallel' grid axis
    # over the batch to shard the recurrence across v7x's two TensorCores.
    return out_pad[:B, :O]


def reference_forward(tokens, params):
    """Pure-JAX f32 reference mirroring torch semantics."""
    emb = jnp.take(params["embedding"], tokens, axis=0)    # (B, T, E)
    B, T, _ = emb.shape
    H = params["w_hh"].shape[0]
    h = jnp.zeros((B, H), jnp.float32)
    for t in range(T):
        h = jnp.tanh(emb[:, t, :] @ params["w_ih"].T
                     + h @ params["w_hh"].T
                     + params["b_ih"] + params["b_hh"])
    return h @ params["w_fc"].T + params["b_fc"]


def init_params(key, vocab_size, embedding_dim, hidden_dim, output_dim):
    ks = jax.random.split(key, 7)
    s = 1.0 / np.sqrt(hidden_dim)
    return {
        "embedding": jax.random.normal(ks[0], (vocab_size, embedding_dim), jnp.float32),
        "w_ih": jax.random.uniform(ks[1], (hidden_dim, embedding_dim), jnp.float32, -s, s),
        "w_hh": jax.random.uniform(ks[2], (hidden_dim, hidden_dim), jnp.float32, -s, s),
        "b_ih": jax.random.uniform(ks[3], (hidden_dim,), jnp.float32, -s, s),
        "b_hh": jax.random.uniform(ks[4], (hidden_dim,), jnp.float32, -s, s),
        "w_fc": jax.random.uniform(ks[5], (output_dim, hidden_dim), jnp.float32, -s, s),
        "b_fc": jax.random.uniform(ks[6], (output_dim,), jnp.float32, -s, s),
    }


if __name__ == "__main__":
    vocab_size, embedding_dim, hidden_dim, output_dim = 64, 32, 32, 8
    batch, seq = 2, 16          # seq=16 with tt=8 -> 2 grid chunks (exercises carry)

    key = jax.random.PRNGKey(0)
    k_tok, k_par = jax.random.split(key)
    tokens = jax.random.randint(k_tok, (batch, seq), 0, vocab_size, dtype=jnp.int32)
    params = init_params(k_par, vocab_size, embedding_dim, hidden_dim, output_dim)

    fwd = jax.jit(lambda tok, p: rnn_model_forward(tok, p, tt=8))
    out = jax.block_until_ready(fwd(tokens, params))

    ref = reference_forward(tokens, params)
    # bf16 matmul operands (f32 accumulation) -> slightly looser tolerance.
    np.testing.assert_allclose(np.asarray(out), np.asarray(ref), rtol=2e-2, atol=2e-2)

    print("KERNEL_OK")
</pallas_src>

<mosaic_0001>
module attributes {stable_mosaic.version = 11 : i64} {
  func.func @rnn_kernel(%arg0: i32, %arg1: memref<8x8x128xf32, #tpu.memory_space<vmem>>, %arg2: memref<128x128xbf16, #tpu.memory_space<vmem>>, %arg3: memref<128x128xbf16, #tpu.memory_space<vmem>>, %arg4: memref<1x128xf32, #tpu.memory_space<vmem>>, %arg5: memref<8x128xf32, #tpu.memory_space<vmem>>, %arg6: memref<8x128xf32, #tpu.memory_space<vmem>>) attributes {dimension_semantics = [#tpu.dimension_semantics<arbitrary>], iteration_bounds = array<i64: 2>, scalar_prefetch = 0 : i64, scratch_operands = 1 : i64, tpu.core_type = #tpu.core_type<tc>, window_params = [{transform_indices = @transform_0, window_bounds = array<i64: 8, 8, 128>}, {pipeline_mode = #tpu.pipeline_mode<synchronous>, transform_indices = @transform_1, window_bounds = array<i64: 128, 128>}, {pipeline_mode = #tpu.pipeline_mode<synchronous>, transform_indices = @transform_2, window_bounds = array<i64: 128, 128>}, {pipeline_mode = #tpu.pipeline_mode<synchronous>, transform_indices = @transform_3, window_bounds = array<i64: 1, 128>}, {pipeline_mode = #tpu.pipeline_mode<synchronous>, transform_indices = @transform_4, window_bounds = array<i64: 8, 128>}]} {
    %c0_i32 = arith.constant 0 : i32
    %0 = arith.cmpi eq, %arg0, %c0_i32 : i32
    %1 = arith.extui %0 : i1 to i32
    %c0_i32_0 = arith.constant 0 : i32
    %2 = arith.cmpi ne, %1, %c0_i32_0 : i32
    scf.if %2 {
      %cst_31 = arith.constant 0.000000e+00 : f32
      %57 = vector.broadcast %cst_31 : f32 to vector<8x128xf32>
      %c0_32 = arith.constant 0 : index
      %c0_33 = arith.constant 0 : index
      %58 = vector.load %arg6[%c0_32, %c0_33] : memref<8x128xf32, #tpu.memory_space<vmem>>, vector<8x128xf32>
      tpu.vector_store %arg6[%c0_32, %c0_33], %57 {strides = array<i32>} : memref<8x128xf32, #tpu.memory_space<vmem>>, vector<8x128xf32>,
    } else {
    }
    %c0 = arith.constant 0 : index
    %c0_1 = arith.constant 0 : index
    %3 = vector.load %arg2[%c0, %c0_1] : memref<128x128xbf16, #tpu.memory_space<vmem>>, vector<128x128xbf16>
    %c0_2 = arith.constant 0 : index
    %c0_3 = arith.constant 0 : index
    %4 = vector.load %arg6[%c0_2, %c0_3] : memref<8x128xf32, #tpu.memory_space<vmem>>, vector<8x128xf32>
    %c0_4 = arith.constant 0 : index
    %c0_5 = arith.constant 0 : index
    %c0_6 = arith.constant 0 : index
    %5 = vector.load %arg1[%c0_4, %c0_5, %c0_6] : memref<8x8x128xf32, #tpu.memory_space<vmem>>, vector<1x8x128xf32>
    %6 = vector.shape_cast %5 : vector<1x8x128xf32> to vector<8x128xf32>
    %7 = arith.truncf %4 : vector<8x128xf32> to vector<8x128xbf16>
    %cst = arith.constant dense<0.000000e+00> : vector<8x128xf32>
    %8 = tpu.matmul %7, %3, %cst {dimension_numbers = #tpu.dot_dimension_numbers<[1], [0], [0], [1], [0, 0, 1, 1], [], []>} : vector<8x128xbf16>, vector<128x128xbf16>, vector<8x128xf32> -> vector<8x128xf32>
    %9 = arith.addf %6, %8 : vector<8x128xf32>
    %10 = math.tanh %9 : vector<8x128xf32>
    %c1 = arith.constant 1 : index
    %c0_7 = arith.constant 0 : index
    %c0_8 = arith.constant 0 : index
    %11 = vector.load %arg1[%c1, %c0_7, %c0_8] : memref<8x8x128xf32, #tpu.memory_space<vmem>>, vector<1x8x128xf32>
    %12 = vector.shape_cast %11 : vector<1x8x128xf32> to vector<8x128xf32>
    %13 = arith.truncf %10 : vector<8x128xf32> to vector<8x128xbf16>
    %cst_9 = arith.constant dense<0.000000e+00> : vector<8x128xf32>
    %14 = tpu.matmul %13, %3, %cst_9 {dimension_numbers = #tpu.dot_dimension_numbers<[1], [0], [0], [1], [0, 0, 1, 1], [], []>} : vector<8x128xbf16>, vector<128x128xbf16>, vector<8x128xf32> -> vector<8x128xf32>
    %15 = arith.addf %12, %14 : vector<8x128xf32>
    %16 = math.tanh %15 : vector<8x128xf32>
    %c2 = arith.constant 2 : index
    %c0_10 = arith.constant 0 : index
    %c0_11 = arith.constant 0 : index
    %17 = vector.load %arg1[%c2, %c0_10, %c0_11] : memref<8x8x128xf32, #tpu.memory_space<vmem>>, vector<1x8x128xf32>
    %18 = vector.shape_cast %17 : vector<1x8x128xf32> to vector<8x128xf32>
    %19 = arith.truncf %16 : vector<8x128xf32> to vector<8x128xbf16>
    %cst_12 = arith.constant dense<0.000000e+00> : vector<8x128xf32>
    %20 = tpu.matmul %19, %3, %cst_12 {dimension_numbers = #tpu.dot_dimension_numbers<[1], [0], [0], [1], [0, 0, 1, 1], [], []>} : vector<8x128xbf16>, vector<128x128xbf16>, vector<8x128xf32> -> vector<8x128xf32>
    %21 = arith.addf %18, %20 : vector<8x128xf32>
    %22 = math.tanh %21 : vector<8x128xf32>
    %c3 = arith.constant 3 : index
    %c0_13 = arith.constant 0 : index
    %c0_14 = arith.constant 0 : index
    %23 = vector.load %arg1[%c3, %c0_13, %c0_14] : memref<8x8x128xf32, #tpu.memory_space<vmem>>, vector<1x8x128xf32>
    %24 = vector.shape_cast %23 : vector<1x8x128xf32> to vector<8x128xf32>
    %25 = arith.truncf %22 : vector<8x128xf32> to vector<8x128xbf16>
    %cst_15 = arith.constant dense<0.000000e+00> : vector<8x128xf32>
    %26 = tpu.matmul %25, %3, %cst_15 {dimension_numbers = #tpu.dot_dimension_numbers<[1], [0], [0], [1], [0, 0, 1, 1], [], []>} : vector<8x128xbf16>, vector<128x128xbf16>, vector<8x128xf32> -> vector<8x128xf32>
    %27 = arith.addf %24, %26 : vector<8x128xf32>
    %28 = math.tanh %27 : vector<8x128xf32>
    %c4 = arith.constant 4 : index
    %c0_16 = arith.constant 0 : index
    %c0_17 = arith.constant 0 : index
    %29 = vector.load %arg1[%c4, %c0_16, %c0_17] : memref<8x8x128xf32, #tpu.memory_space<vmem>>, vector<1x8x128xf32>
    %30 = vector.shape_cast %29 : vector<1x8x128xf32> to vector<8x128xf32>
    %31 = arith.truncf %28 : vector<8x128xf32> to vector<8x128xbf16>
    %cst_18 = arith.constant dense<0.000000e+00> : vector<8x128xf32>
    %32 = tpu.matmul %31, %3, %cst_18 {dimension_numbers = #tpu.dot_dimension_numbers<[1], [0], [0], [1], [0, 0, 1, 1], [], []>} : vector<8x128xbf16>, vector<128x128xbf16>, vector<8x128xf32> -> vector<8x128xf32>
    %33 = arith.addf %30, %32 : vector<8x128xf32>
    %34 = math.tanh %33 : vector<8x128xf32>
    %c5 = arith.constant 5 : index
    %c0_19 = arith.constant 0 : index
    %c0_20 = arith.constant 0 : index
    %35 = vector.load %arg1[%c5, %c0_19, %c0_20] : memref<8x8x128xf32, #tpu.memory_space<vmem>>, vector<1x8x128xf32>
    %36 = vector.shape_cast %35 : vector<1x8x128xf32> to vector<8x128xf32>
    %37 = arith.truncf %34 : vector<8x128xf32> to vector<8x128xbf16>
    %cst_21 = arith.constant dense<0.000000e+00> : vector<8x128xf32>
    %38 = tpu.matmul %37, %3, %cst_21 {dimension_numbers = #tpu.dot_dimension_numbers<[1], [0], [0], [1], [0, 0, 1, 1], [], []>} : vector<8x128xbf16>, vector<128x128xbf16>, vector<8x128xf32> -> vector<8x128xf32>
    %39 = arith.addf %36, %38 : vector<8x128xf32>
    %40 = math.tanh %39 : vector<8x128xf32>
    %c6 = arith.constant 6 : index
    %c0_22 = arith.constant 0 : index
    %c0_23 = arith.constant 0 : index
    %41 = vector.load %arg1[%c6, %c0_22, %c0_23] : memref<8x8x128xf32, #tpu.memory_space<vmem>>, vector<1x8x128xf32>
    %42 = vector.shape_cast %41 : vector<1x8x128xf32> to vector<8x128xf32>
    %43 = arith.truncf %40 : vector<8x128xf32> to vector<8x128xbf16>
    %cst_24 = arith.constant dense<0.000000e+00> : vector<8x128xf32>
    %44 = tpu.matmul %43, %3, %cst_24 {dimension_numbers = #tpu.dot_dimension_numbers<[1], [0], [0], [1], [0, 0, 1, 1], [], []>} : vector<8x128xbf16>, vector<128x128xbf16>, vector<8x128xf32> -> vector<8x128xf32>
    %45 = arith.addf %42, %44 : vector<8x128xf32>
    %46 = math.tanh %45 : vector<8x128xf32>
    %c7 = arith.constant 7 : index
    %c0_25 = arith.constant 0 : index
    %c0_26 = arith.constant 0 : index
    %47 = vector.load %arg1[%c7, %c0_25, %c0_26] : memref<8x8x128xf32, #tpu.memory_space<vmem>>, vector<1x8x128xf32>
    %48 = vector.shape_cast %47 : vector<1x8x128xf32> to vector<8x128xf32>
    %49 = arith.truncf %46 : vector<8x128xf32> to vector<8x128xbf16>
    %cst_27 = arith.constant dense<0.000000e+00> : vector<8x128xf32>
    %50 = tpu.matmul %49, %3, %cst_27 {dimension_numbers = #tpu.dot_dimension_numbers<[1], [0], [0], [1], [0, 0, 1, 1], [], []>} : vector<8x128xbf16>, vector<128x128xbf16>, vector<8x128xf32> -> vector<8x128xf32>
    %51 = arith.addf %48, %50 : vector<8x128xf32>
    %52 = math.tanh %51 : vector<8x128xf32>
    %c0_28 = arith.constant 0 : index
    %c0_29 = arith.constant 0 : index
    %53 = vector.load %arg6[%c0_28, %c0_29] : memref<8x128xf32, #tpu.memory_space<vmem>>, vector<8x128xf32>
    tpu.vector_store %arg6[%c0_28, %c0_29], %52 {strides = array<i32>} : memref<8x128xf32, #tpu.memory_space<vmem>>, vector<8x128xf32>,
    %c1_i32 = arith.constant 1 : i32
    %54 = arith.cmpi eq, %arg0, %c1_i32 : i32
    %55 = arith.extui %54 : i1 to i32
    %c0_i32_30 = arith.constant 0 : i32
    %56 = arith.cmpi ne, %55, %c0_i32_30 : i32
    scf.if %56 {
      %c0_31 = arith.constant 0 : index
      %c0_32 = arith.constant 0 : index
      %57 = vector.load %arg6[%c0_31, %c0_32] : memref<8x128xf32, #tpu.memory_space<vmem>>, vector<8x128xf32>
      %58 = arith.truncf %57 : vector<8x128xf32> to vector<8x128xbf16>
      %c0_33 = arith.constant 0 : index
      %c0_34 = arith.constant 0 : index
      %59 = vector.load %arg3[%c0_33, %c0_34] : memref<128x128xbf16, #tpu.memory_space<vmem>>, vector<128x128xbf16>
      %cst_35 = arith.constant dense<0.000000e+00> : vector<8x128xf32>
      %60 = tpu.matmul %58, %59, %cst_35 {dimension_numbers = #tpu.dot_dimension_numbers<[1], [0], [0], [1], [0, 0, 1, 1], [], []>} : vector<8x128xbf16>, vector<128x128xbf16>, vector<8x128xf32> -> vector<8x128xf32>
      %c0_36 = arith.constant 0 : index
      %c0_37 = arith.constant 0 : index
      %61 = vector.load %arg4[%c0_36, %c0_37] : memref<1x128xf32, #tpu.memory_space<vmem>>, vector<1x128xf32>
      %62 = vector.broadcast %61 : vector<1x128xf32> to vector<8x128xf32>
      %63 = arith.addf %60, %62 : vector<8x128xf32>
      %c0_38 = arith.constant 0 : index
      %c0_39 = arith.constant 0 : index
      %64 = vector.load %arg5[%c0_38, %c0_39] : memref<8x128xf32, #tpu.memory_space<vmem>>, vector<8x128xf32>
      tpu.vector_store %arg5[%c0_38, %c0_39], %63 {strides = array<i32>} : memref<8x128xf32, #tpu.memory_space<vmem>>, vector<8x128xf32>,
    } else {
    }
    return
  }
  func.func @transform_0(%arg0: i32) -> (i32, i32, i32) {
    %c0_i32 = arith.constant 0 : i32
    %c0_i32_0 = arith.constant 0 : i32
    %c0_i32_1 = arith.constant 0 : i32
    return %arg0, %c0_i32, %c0_i32_0 : i32, i32, i32
  }
  func.func @transform_1(%arg0: i32) -> (i32, i32) {
    %c0_i32 = arith.constant 0 : i32
    %c0_i32_0 = arith.constant 0 : i32
    %c0_i32_1 = arith.constant 0 : i32
    return %c0_i32, %c0_i32_0 : i32, i32
  }
  func.func @transform_2(%arg0: i32) -> (i32, i32) {
    %c0_i32 = arith.constant 0 : i32
    %c0_i32_0 = arith.constant 0 : i32
    %c0_i32_1 = arith.constant 0 : i32
    return %c0_i32, %c0_i32_0 : i32, i32
  }
  func.func @transform_3(%arg0: i32) -> (i32, i32) {
    %c0_i32 = arith.constant 0 : i32
    %c0_i32_0 = arith.constant 0 : i32
    %c0_i32_1 = arith.constant 0 : i32
    return %c0_i32, %c0_i32_0 : i32, i32
  }
  func.func @transform_4(%arg0: i32) -> (i32, i32) {
    %c0_i32 = arith.constant 0 : i32
    %c0_i32_0 = arith.constant 0 : i32
    %c0_i32_1 = arith.constant 0 : i32
    return %c0_i32, %c0_i32_0 : i32, i32
  }
}

</mosaic_0001>

<bundles_post_ra>
// kernel: _lambda_.1
= control target key start
LH: loop header
LB: loop body
LE: loop exit
PB: predicated region body
PF: predicated region fallthrough
CT: control target
= control target key end

     0   :  { %s1140_s15 = smov 0   ;;  %s1383_s0 = inlined_call_operand.vmem [shape: f32[16,8,128], index: 0, kind: input, shape index: {}]   ;;  %s1384_s1 = inlined_call_operand.vmem [shape: bf16[128,128], index: 1, kind: input, shape index: {}]   ;;  %s1385_s2 = inlined_call_operand.vmem [shape: bf16[128,128], index: 2, kind: input, shape index: {}]   ;;  %s1386_s3 = inlined_call_operand.vmem [shape: f32[1,128], index: 3, kind: input, shape index: {}]   ;;  %s1387_s4 = inlined_call_operand.vmem [shape: f32[8,128], index: 4, kind: output, shape index: {}]  }
   0x1 LB: > { %s1146_s16 = sadd.s32 4294967295, %s1108_s15   ;;  %p765_p0 = scmp.ge.s32.totalorder %s1108_s15, 1  ;;  %s1108_s15 = sphi %s1140_s15, %s14_s15  }
   0x2   : > { %p158_p1 = scmp.lt.s32.totalorder %s1108_s15, 3 }
   0x4   : > { %p159_p2 = pnand %p765_p0, %p158_p1 }
   0x5   : > { %s766_s17 = sshll.u32 (!%p159_p2), %s1146_s16, 3  ;;  %p768_p4 = scmp.ne.s32.totalorder (!%p159_p2), %s1146_s16, 0 }
   0x6   : > { %162 = sbr.rel (%p159_p2) target bundleno = 1970 (0x7b2), region = 36  ;;  %p180_p3 = scmp.lt.s32.totalorder (!%p159_p2), %s766_s17, 15 }
   0xb   : > { %s1389_s17 = smov (!%p180_p3, %s766_s17), 15  ;;  %189 = sbr.rel (%p768_p4) target bundleno = 18 (0x12), region = 40 }
   0xc   : > { %s767_s18 = sshll.u32 %s1389_s17, 3 }
   0xd   : > { %s1154_s21 = scalar_lea.vmem %s1383_s0, %s767_s18 }
  0x10   : > { %v1110_v0 = vmov 0.0  }
  0x11   : > { %190 = vst [vmem:[#allocation2] sm:$0xff] %v1110_v0 }
  0x12 PF: > { %v1160_v1 = vld [vmem:[%s1384_s1 + $0x38] sm:$0xff]   ;;  %v1111_v2 = vmov 0.0   ;;  %v1168_v3 = vld [vmem:[%s1384_s1 + $0x30] sm:$0xff]   ;;  %vm1112_vm0 = vmmov 0   ;;  %v1181_v4 = vld [vmem:[%s1384_s1 + $0x28] sm:$0xff]   ;;  %p784_p5 = scmp.ne.s32.totalorder %s1146_s16, 1 }
  0x13   : > { %877 = vmatprep.subr.bf16.mxu0 %v1111_v2  ;;  %897 = vmatprep.subr.bf16.mxu1 %v1111_v2  ;;  %v1190_v5 = vld [vmem:[%s1384_s1 + $0x20] sm:$0xff]   ;;  %v1199_v6 = vld [vmem:[%s1384_s1 + $0x18] sm:$0xff]   ;;  %v1208_v7 = vld [vmem:[%s1384_s1 + $0x10] sm:$0xff]  }
  0x14   : > { %878 = vmatpush3.bf16.msra.mxu0 %v1160_v1  ;;  %893 = vmatprep.mubr.msk.bf16.mxu0 %vm1112_vm0, %v1111_v2  ;;  %v1217_v8 = vld [vmem:[%s1384_s1 + $0x8] sm:$0xff]   ;;  %v1226_v9 = vld [vmem:[%s1384_s1] sm:$0xff]   ;;  %v778_v28 = vld [vmem:[%s1154_s21 + $0x10] sm:$0xff] }
  0x15   : > { %879 = vmatprep.subr.bf16.mxu0 %v1111_v2  ;;  %898 = vmatpush3.bf16.msra.mxu1 %v1160_v1  ;;  %v208_v12 = vld [vmem:[%s1154_s21] sm:$0xff]  ;;  %v777_v20 = vld [vmem:[%s1154_s21 + $0x8] sm:$0xff]  ;;  %v779_v36 = vld [vmem:[%s1154_s21 + $0x18] sm:$0xff] }
  0x16   : > { %899 = vmatprep.subr.bf16.mxu1 %v1111_v2  ;;  %913 = vmatprep.mubr.msk.bf16.mxu1 %vm1112_vm0, %v1111_v2  ;;  %v780_v44 = vld [vmem:[%s1154_s21 + $0x20] sm:$0xff]  ;;  %v781_v52 = vld [vmem:[%s1154_s21 + $0x28] sm:$0xff]  ;;  %v782_v60 = vld [vmem:[%s1154_s21 + $0x30] sm:$0xff] }
  0x18   : > { %880 = vmatpush3.bf16.msra.mxu0 %v1168_v3  ;;  %v207_v10 = vld [vmem:[#allocation2] sm:$0xff] }
  0x19   : > { %881 = vmatprep.subr.bf16.mxu0 %v1111_v2  ;;  %900 = vmatpush3.bf16.msra.mxu1 %v1168_v3  ;;  %v209_v11 = vpack.c.bf16 %v207_v10, %v207_v10 }
  0x1a   : > { %901 = vmatprep.subr.bf16.mxu1 %v1111_v2 }
  0x1c   : > { %882 = vmatpush3.bf16.msra.mxu0 %v1181_v4 }
  0x1d   : > { %883 = vmatprep.subr.bf16.mxu0 %v1111_v2  ;;  %902 = vmatpush3.bf16.msra.mxu1 %v1181_v4 }
  0x1e   : > { %903 = vmatprep.subr.bf16.mxu1 %v1111_v2 }
  0x20   : > { %884 = vmatpush3.bf16.msra.mxu0 %v1190_v5 }
  0x21   : > { %885 = vmatprep.subr.bf16.mxu0 %v1111_v2  ;;  %904 = vmatpush3.bf16.msra.mxu1 %v1190_v5 }
  0x22   : > { %905 = vmatprep.subr.bf16.mxu1 %v1111_v2 }
  0x24   : > { %886 = vmatpush3.bf16.msra.mxu0 %v1199_v6 }
  0x25   : > { %887 = vmatprep.subr.bf16.mxu0 %v1111_v2  ;;  %906 = vmatpush3.bf16.msra.mxu1 %v1199_v6 }
  0x26   : > { %907 = vmatprep.subr.bf16.mxu1 %v1111_v2 }
  0x28   : > { %888 = vmatpush3.bf16.msra.mxu0 %v1208_v7 }
  0x29   : > { %889 = vmatprep.subr.bf16.mxu0 %v1111_v2  ;;  %908 = vmatpush3.bf16.msra.mxu1 %v1208_v7 }
  0x2a   : > { %909 = vmatprep.subr.bf16.mxu1 %v1111_v2 }
  0x2c   : > { %890 = vmatpush3.bf16.msra.mxu0 %v1217_v8 }
  0x2d   : > { %891 = vmatprep.subr.bf16.mxu0 %v1111_v2  ;;  %910 = vmatpush3.bf16.msra.mxu1 %v1217_v8 }
  0x2e   : > { %911 = vmatprep.subr.bf16.mxu1 %v1111_v2 }
  0x30   : > { %892 = vmatpush3.bf16.msra.mxu0 %v1226_v9 }
  0x31   : > { %912 = vmatpush3.bf16.msra.mxu1 %v1226_v9  ;;  %917 = vmatprep.subr.bf16.mxu0 %v1111_v2 }
  0x32   : > { %937 = vmatprep.subr.bf16.mxu1 %v1111_v2 }
  0x33   : > { %894 = vmatmul.mubr.bf16.vlgmr.msra.gmra.mxu0 %v209_v11 }
  0x34   : > { %918 = vmatpush3.bf16.msra.mxu0 %v1160_v1  ;;  %933 = vmatprep.mubr.msk.bf16.mxu0 %vm1112_vm0, %v1111_v2 }
  0x35   : > { %919 = vmatprep.subr.bf16.mxu0 %v1111_v2 }
  0x38   : > { %920 = vmatpush3.bf16.msra.mxu0 %v1168_v3 }
  0x39   : > { %921 = vmatprep.subr.bf16.mxu0 %v1111_v2 }
  0x3c   : > { %922 = vmatpush3.bf16.msra.mxu0 %v1181_v4 }
  0x3d   : > { %923 = vmatprep.subr.bf16.mxu0 %v1111_v2 }
  0x40   : > { %924 = vmatpush3.bf16.msra.mxu0 %v1190_v5 }
  0x41   : > { %925 = vmatprep.subr.bf16.mxu0 %v1111_v2 }
  0x44   : > { %926 = vmatpush3.bf16.msra.mxu0 %v1199_v6 }
  0x45   : > { %927 = vmatprep.subr.bf16.mxu0 %v1111_v2 }
  0x48   : > { %928 = vmatpush3.bf16.msra.mxu0 %v1208_v7 }
  0x49   : > { %929 = vmatprep.subr.bf16.mxu0 %v1111_v2 }
  0x4c   : > { %930 = vmatpush3.bf16.msra.mxu0 %v1217_v8 }
  0x4d   : > { %931 = vmatprep.subr.bf16.mxu0 %v1111_v2 }
  0x50   : > { %932 = vmatpush3.bf16.msra.mxu0 %v1226_v9 }
  0x51   : > { %957 = vmatprep.subr.bf16.mxu0 %v1111_v2 }
  0xf3   : > { %v292_v13 = vpop.f32.mrf.mxu0 }
  0xf4   : > { %v298_v14 = vadd.f32 %v292_v13, %v208_v12 }
  0xf5   : > { %v895_v15 = vpop.f32.mrf.mxu0 }
  0xf6   : > { %1078 = vtanh.f32 %v298_v14 }
  0xf7   : > { %v295_v16 = vpop.f32.mrf.mxu0 }
  0xf9   : > { %v896_v17 = vpop.f32.mrf.mxu0 }
 0x103   : > { %v1079_v18 = vpop.eup %1078 }
 0x104   : > { %v302_v19 = vpack.c.bf16 %v1079_v18, %v1079_v18 }
 0x106   : > { %914 = vmatmul.mubr.bf16.vlgmr.msra.gmra.mxu1 %v302_v19 }
 0x107   : > { %938 = vmatpush3.bf16.msra.mxu1 %v1160_v1  ;;  %953 = vmatprep.mubr.msk.bf16.mxu1 %vm1112_vm0, %v1111_v2 }
 0x108   : > { %939 = vmatprep.subr.bf16.mxu1 %v1111_v2 }
 0x10b   : > { %940 = vmatpush3.bf16.msra.mxu1 %v1168_v3 }
 0x10c   : > { %941 = vmatprep.subr.bf16.mxu1 %v1111_v2 }
 0x10f   : > { %942 = vmatpush3.bf16.msra.mxu1 %v1181_v4 }
 0x110   : > { %943 = vmatprep.subr.bf16.mxu1 %v1111_v2 }
 0x113   : > { %944 = vmatpush3.bf16.msra.mxu1 %v1190_v5 }
 0x114   : > { %945 = vmatprep.subr.bf16.mxu1 %v1111_v2 }
 0x117   : > { %946 = vmatpush3.bf16.msra.mxu1 %v1199_v6 }
 0x118   : > { %947 = vmatprep.subr.bf16.mxu1 %v1111_v2 }
 0x11b   : > { %948 = vmatpush3.bf16.msra.mxu1 %v1208_v7 }
 0x11c   : > { %949 = vmatprep.subr.bf16.mxu1 %v1111_v2 }
 0x11f   : > { %950 = vmatpush3.bf16.msra.mxu1 %v1217_v8 }
 0x120   : > { %951 = vmatprep.subr.bf16.mxu1 %v1111_v2 }
 0x123   : > { %952 = vmatpush3.bf16.msra.mxu1 %v1226_v9 }
 0x124   : > { %977 = vmatprep.subr.bf16.mxu1 %v1111_v2 }
 0x1c6   : > { %v337_v21 = vpop.f32.mrf.mxu1 }
 0x1c7   : > { %v343_v22 = vadd.f32 %v777_v20, %v337_v21 }
 0x1c8   : > { %v915_v23 = vpop.f32.mrf.mxu1 }
 0x1c9   : > { %1080 = vtanh.f32 %v343_v22 }
 0x1ca   : > { %v340_v24 = vpop.f32.mrf.mxu1 }
 0x1cc   : > { %v916_v25 = vpop.f32.mrf.mxu1 }
 0x1d6   : > { %v1081_v26 = vpop.eup %1080 }
 0x1d7   : > { %v347_v27 = vpack.c.bf16 %v1081_v26, %v1081_v26 }
 0x1d9   : > { %934 = vmatmul.mubr.bf16.vlgmr.msra.gmra.mxu0 %v347_v27 }
 0x1da   : > { %958 = vmatpush3.bf16.msra.mxu0 %v1160_v1  ;;  %973 = vmatprep.mubr.msk.bf16.mxu0 %vm1112_vm0, %v1111_v2 }
 0x1db   : > { %959 = vmatprep.subr.bf16.mxu0 %v1111_v2 }
 0x1de   : > { %960 = vmatpush3.bf16.msra.mxu0 %v1168_v3 }
 0x1df   : > { %961 = vmatprep.subr.bf16.mxu0 %v1111_v2 }
 0x1e2   : > { %962 = vmatpush3.bf16.msra.mxu0 %v1181_v4 }
 0x1e3   : > { %963 = vmatprep.subr.bf16.mxu0 %v1111_v2 }
 0x1e6   : > { %964 = vmatpush3.bf16.msra.mxu0 %v1190_v5 }
 0x1e7   : > { %965 = vmatprep.subr.bf16.mxu0 %v1111_v2 }
 0x1ea   : > { %966 = vmatpush3.bf16.msra.mxu0 %v1199_v6 }
 0x1eb   : > { %967 = vmatprep.subr.bf16.mxu0 %v1111_v2 }
 0x1ee   : > { %968 = vmatpush3.bf16.msra.mxu0 %v1208_v7 }
 0x1ef   : > { %969 = vmatprep.subr.bf16.mxu0 %v1111_v2 }
 0x1f2   : > { %970 = vmatpush3.bf16.msra.mxu0 %v1217_v8 }
 0x1f3   : > { %971 = vmatprep.subr.bf16.mxu0 %v1111_v2 }
 0x1f6   : > { %972 = vmatpush3.bf16.msra.mxu0 %v1226_v9 }
 0x1f7   : > { %997 = vmatprep.subr.bf16.mxu0 %v1111_v2 }
 0x299   : > { %v382_v29 = vpop.f32.mrf.mxu0 }
 0x29a   : > { %v388_v30 = vadd.f32 %v778_v28, %v382_v29 }
 0x29b   : > { %v935_v31 = vpop.f32.mrf.mxu0 }
 0x29c   : > { %1082 = vtanh.f32 %v388_v30 }
 0x29d   : > { %v385_v32 = vpop.f32.mrf.mxu0 }
 0x29f   : > { %v936_v33 = vpop.f32.mrf.mxu0 }
 0x2a9   : > { %v1083_v34 = vpop.eup %1082 }
 0x2aa   : > { %v392_v35 = vpack.c.bf16 %v1083_v34, %v1083_v34 }
 0x2ac   : > { %954 = vmatmul.mubr.bf16.vlgmr.msra.gmra.mxu1 %v392_v35 }
 0x2ad   : > { %978 = vmatpush3.bf16.msra.mxu1 %v1160_v1  ;;  %993 = vmatprep.mubr.msk.bf16.mxu1 %vm1112_vm0, %v1111_v2 }
 0x2ae   : > { %979 = vmatprep.subr.bf16.mxu1 %v1111_v2 }
 0x2b1   : > { %980 = vmatpush3.bf16.msra.mxu1 %v1168_v3 }
 0x2b2   : > { %981 = vmatprep.subr.bf16.mxu1 %v1111_v2 }
 0x2b5   : > { %982 = vmatpush3.bf16.msra.mxu1 %v1181_v4 }
 0x2b6   : > { %983 = vmatprep.subr.bf16.mxu1 %v1111_v2 }
 0x2b9   : > { %984 = vmatpush3.bf16.msra.mxu1 %v1190_v5 }
 0x2ba   : > { %985 = vmatprep.subr.bf16.mxu1 %v1111_v2 }
 0x2bd   : > { %986 = vmatpush3.bf16.msra.mxu1 %v1199_v6 }
 0x2be   : > { %987 = vmatprep.subr.bf16.mxu1 %v1111_v2 }
 0x2c1   : > { %988 = vmatpush3.bf16.msra.mxu1 %v1208_v7 }
 0x2c2   : > { %989 = vmatprep.subr.bf16.mxu1 %v1111_v2 }
 0x2c5   : > { %990 = vmatpush3.bf16.msra.mxu1 %v1217_v8 }
 0x2c6   : > { %991 = vmatprep.subr.bf16.mxu1 %v1111_v2 }
 0x2c9   : > { %992 = vmatpush3.bf16.msra.mxu1 %v1226_v9 }
 0x2ca   : > { %1017 = vmatprep.subr.bf16.mxu1 %v1111_v2 }
 0x36c   : > { %v427_v37 = vpop.f32.mrf.mxu1 }
 0x36d   : > { %v433_v38 = vadd.f32 %v779_v36, %v427_v37 }
 0x36e   : > { %v955_v39 = vpop.f32.mrf.mxu1 }
 0x36f   : > { %1084 = vtanh.f32 %v433_v38 }
 0x370   : > { %v430_v40 = vpop.f32.mrf.mxu1 }
 0x372   : > { %v956_v41 = vpop.f32.mrf.mxu1 }
 0x37c   : > { %v1085_v42 = vpop.eup %1084 }
 0x37d   : > { %v437_v43 = vpack.c.bf16 %v1085_v42, %v1085_v42 }
 0x37f   : > { %974 = vmatmul.mubr.bf16.vlgmr.msra.gmra.mxu0 %v437_v43 }
 0x380   : > { %998 = vmatpush3.bf16.msra.mxu0 %v1160_v1  ;;  %1013 = vmatprep.mubr.msk.bf16.mxu0 %vm1112_vm0, %v1111_v2 }
 0x381   : > { %999 = vmatprep.subr.bf16.mxu0 %v1111_v2 }
 0x384   : > { %1000 = vmatpush3.bf16.msra.mxu0 %v1168_v3 }
 0x385   : > { %1001 = vmatprep.subr.bf16.mxu0 %v1111_v2 }
 0x388   : > { %1002 = vmatpush3.bf16.msra.mxu0 %v1181_v4 }
 0x389   : > { %1003 = vmatprep.subr.bf16.mxu0 %v1111_v2 }
 0x38c   : > { %1004 = vmatpush3.bf16.msra.mxu0 %v1190_v5 }
 0x38d   : > { %1005 = vmatprep.subr.bf16.mxu0 %v1111_v2 }
 0x390   : > { %1006 = vmatpush3.bf16.msra.mxu0 %v1199_v6 }
 0x391   : > { %1007 = vmatprep.subr.bf16.mxu0 %v1111_v2 }
 0x394   : > { %1008 = vmatpush3.bf16.msra.mxu0 %v1208_v7 }
 0x395   : > { %1009 = vmatprep.subr.bf16.mxu0 %v1111_v2 }
 0x398   : > { %1010 = vmatpush3.bf16.msra.mxu0 %v1217_v8 }
 0x399   : > { %1011 = vmatprep.subr.bf16.mxu0 %v1111_v2 }
 0x39c   : > { %1012 = vmatpush3.bf16.msra.mxu0 %v1226_v9 }
 0x43f   : > { %v472_v45 = vpop.f32.mrf.mxu0 }
 0x440   : > { %v478_v46 = vadd.f32 %v780_v44, %v472_v45 }
 0x441   : > { %v975_v47 = vpop.f32.mrf.mxu0 }
 0x442   : > { %1086 = vtanh.f32 %v478_v46 }
 0x443   : > { %v475_v48 = vpop.f32.mrf.mxu0 }
 0x445   : > { %v976_v49 = vpop.f32.mrf.mxu0 }
 0x44f   : > { %v1087_v50 = vpop.eup %1086 }
 0x450   : > { %v482_v51 = vpack.c.bf16 %v1087_v50, %v1087_v50 }
 0x452   : > { %994 = vmatmul.mubr.bf16.vlgmr.msra.gmra.mxu1 %v482_v51 }
 0x453   : > { %1018 = vmatpush3.bf16.msra.mxu1 %v1160_v1  ;;  %1033 = vmatprep.mubr.msk.bf16.mxu1 %vm1112_vm0, %v1111_v2 }
 0x454   : > { %1019 = vmatprep.subr.bf16.mxu1 %v1111_v2 }
 0x457   : > { %1020 = vmatpush3.bf16.msra.mxu1 %v1168_v3 }
 0x458   : > { %1021 = vmatprep.subr.bf16.mxu1 %v1111_v2 }
 0x45b   : > { %1022 = vmatpush3.bf16.msra.mxu1 %v1181_v4  ;;  %v783_v4 = vld [vmem:[%s1154_s21 + $0x38] sm:$0xff] }
 0x45c   : > { %1023 = vmatprep.subr.bf16.mxu1 %v1111_v2 }
 0x45f   : > { %1024 = vmatpush3.bf16.msra.mxu1 %v1190_v5 }
 0x460   : > { %1025 = vmatprep.subr.bf16.mxu1 %v1111_v2 }
 0x463   : > { %1026 = vmatpush3.bf16.msra.mxu1 %v1199_v6 }
 0x464   : > { %1027 = vmatprep.subr.bf16.mxu1 %v1111_v2 }
 0x467   : > { %1028 = vmatpush3.bf16.msra.mxu1 %v1208_v7 }
 0x468   : > { %1029 = vmatprep.subr.bf16.mxu1 %v1111_v2 }
 0x46b   : > { %1030 = vmatpush3.bf16.msra.mxu1 %v1217_v8 }
 0x46c   : > { %1031 = vmatprep.subr.bf16.mxu1 %v1111_v2 }
 0x46f   : > { %1032 = vmatpush3.bf16.msra.mxu1 %v1226_v9 }
 0x512   : > { %v517_v53 = vpop.f32.mrf.mxu1 }
 0x513   : > { %v523_v54 = vadd.f32 %v781_v52, %v517_v53 }
 0x514   : > { %v995_v55 = vpop.f32.mrf.mxu1 }
 0x515   : > { %1088 = vtanh.f32 %v523_v54 }
 0x516   : > { %v520_v56 = vpop.f32.mrf.mxu1 }
 0x518   : > { %v996_v57 = vpop.f32.mrf.mxu1 }
 0x522   : > { %v1089_v58 = vpop.eup %1088 }
 0x523   : > { %v527_v59 = vpack.c.bf16 %v1089_v58, %v1089_v58 }
 0x525   : > { %1014 = vmatmul.mubr.bf16.vlgmr.msra.gmra.mxu0 %v527_v59 }
 0x5e5   : > { %v562_v61 = vpop.f32.mrf.mxu0 }
 0x5e6   : > { %v568_v62 = vadd.f32 %v782_v60, %v562_v61 }
 0x5e7   : > { %v1015_v63 = vpop.f32.mrf.mxu0 }
 0x5e8   : > { %1090 = vtanh.f32 %v568_v62 }
 0x5e9   : > { %v565_v0 = vpop.f32.mrf.mxu0 }
 0x5eb   : > { %v1016_v1 = vpop.f32.mrf.mxu0 }
 0x5f5   : > { %v1091_v2 = vpop.eup %1090 }
 0x5f6   : > { %v572_v3 = vpack.c.bf16 %v1091_v2, %v1091_v2 }
 0x5f8   : > { %1034 = vmatmul.mubr.bf16.vlgmr.msra.gmra.mxu1 %v572_v3 }
 0x6b8   : > { %v607_v5 = vpop.f32.mrf.mxu1 }
 0x6b9   : > { %v613_v6 = vadd.f32 %v783_v4, %v607_v5 }
 0x6ba   : > { %v1035_v7 = vpop.f32.mrf.mxu1 }
 0x6bb   : > { %1092 = vtanh.f32 %v613_v6 }
 0x6bc   : > { %v610_v8 = vpop.f32.mrf.mxu1 }
 0x6be   : > { %v1036_v9 = vpop.f32.mrf.mxu1 }
 0x6c5   : > { %619 = sbr.rel (%p784_p5) target bundleno = 1970 (0x7b2), region = 44 }
 0x6c8   : > { %v1093_v10 = vpop.eup %1092 }
 0x6c9   : > { %615 = vst [vmem:[#allocation2] sm:$0xff] %v1093_v10 }
 0x6ca   : > { %v1094_v11 = vld [vmem:[%s1385_s2 + $0x38] sm:$0xff]   ;;  %v1113_v12 = vmov 0.0   ;;  %v1095_v13 = vld [vmem:[%s1385_s2 + $0x30] sm:$0xff]   ;;  %vm1114_vm1 = vmmov 0   ;;  %v1096_v14 = vld [vmem:[%s1385_s2 + $0x28] sm:$0xff]  }
 0x6cb   : > { %1037 = vmatprep.subr.bf16.mxu0 %v1113_v12  ;;  %1053 = vmatprep.mubr.msk.bf16.mxu0 %vm1114_vm1, %v1113_v12  ;;  %v1097_v15 = vld [vmem:[%s1385_s2 + $0x20] sm:$0xff]   ;;  %v1098_v16 = vld [vmem:[%s1385_s2 + $0x18] sm:$0xff]   ;;  %v1099_v17 = vld [vmem:[%s1385_s2 + $0x10] sm:$0xff]  }
 0x6cc   : > { %1038 = vmatpush3.bf16.msra.mxu0 %v1094_v11  ;;  %v1100_v18 = vld [vmem:[%s1385_s2 + $0x8] sm:$0xff]   ;;  %v1101_v19 = vld [vmem:[%s1385_s2] sm:$0xff]  }
 0x6cd   : > { %1039 = vmatprep.subr.bf16.mxu0 %v1113_v12  ;;  %v785_v22 = vld [vmem:[%s1386_s3] ss:$0 sm:$0xff] }
 0x6d0   : > { %1040 = vmatpush3.bf16.msra.mxu0 %v1095_v13  ;;  %v620_v20 = vld [vmem:[#allocation2] sm:$0xff] }
 0x6d1   : > { %1041 = vmatprep.subr.bf16.mxu0 %v1113_v12  ;;  %v621_v21 = vpack.c.bf16 %v620_v20, %v620_v20 }
 0x6d4   : > { %1042 = vmatpush3.bf16.msra.mxu0 %v1096_v14 }
 0x6d5   : > { %1043 = vmatprep.subr.bf16.mxu0 %v1113_v12 }
 0x6d8   : > { %1044 = vmatpush3.bf16.msra.mxu0 %v1097_v15 }
 0x6d9   : > { %1045 = vmatprep.subr.bf16.mxu0 %v1113_v12 }
 0x6dc   : > { %1046 = vmatpush3.bf16.msra.mxu0 %v1098_v16 }
 0x6dd   : > { %1047 = vmatprep.subr.bf16.mxu0 %v1113_v12 }
 0x6e0   : > { %1048 = vmatpush3.bf16.msra.mxu0 %v1099_v17 }
 0x6e1   : > { %1049 = vmatprep.subr.bf16.mxu0 %v1113_v12 }
 0x6e4   : > { %1050 = vmatpush3.bf16.msra.mxu0 %v1100_v18 }
 0x6e5   : > { %1051 = vmatprep.subr.bf16.mxu0 %v1113_v12 }
 0x6e8   : > { %1052 = vmatpush3.bf16.msra.mxu0 %v1101_v19 }
 0x6eb   : > { %1054 = vmatmul.mubr.bf16.vlgmr.msra.gmra.mxu0 %v621_v21 }
 0x7ab   : > { %v727_v23 = vpop.f32.mrf.mxu0 }
 0x7ac   : > { %v728_v24 = vadd.f32 %v785_v22, %v727_v23 }
 0x7ad   : > { %v1055_v25 = vpop.f32.mrf.mxu0 }
 0x7ae   : > { %733 = vst [vmem:[%s1387_s4] sm:$0xff] %v728_v24 }
 0x7af   : > { %v730_v26 = vpop.f32.mrf.mxu0 }
 0x7b1   : > { %v1056_v27 = vpop.f32.mrf.mxu0 }
 0x7b2 PF: > { %s14_s15 = sadd.s32 1, %s1108_s15  }
 0x7b3   : > { %p11_p6 = scmp.ge.s32.totalorder %s14_s15, 4  }
 0x7b5   :  { %13 = sbr.rel (!%p11_p6) target bundleno = 1 (0x1), region = 77 }

</bundles_post_ra>
